<compile_context>
chip_gen: v7x
topology: tpu7x:2x2x1
jax: 0.10.0
libtpu: 0.0.40
codegen_flags: <defaults>
</compile_context>

<pallas_src>
import functools

import jax
import jax.numpy as jnp
from jax import lax
from jax.experimental import pallas as pl
from jax.experimental.pallas import tpu as pltpu

PROBE_THRESHOLD = 0.5   # reward_config['probe_threshold'] default
NEGATIVE_IS_1 = True    # reward_config['negative_is_1'] default


def _vmem_capacity_bytes():
    """Per-TensorCore VMEM capacity; conservative fallback = v7x (64 MiB)."""
    try:
        info = pltpu.get_tpu_info()
        cap = getattr(info, "vmem_capacity_bytes", None)
        if cap:
            return int(cap)
    except Exception:
        pass
    return 64 << 20


def _probe_sum_kernel(smin_ref, acts_ref, w_ref, b_ref, plen_ref, out_ref,
                      sum_sc, *, seq_len, n_seq_blocks, chunk):
    # smin_ref: (1,) int32 SMEM   first sequence-block containing generated tokens
    # acts_ref: (1, B, TS, H)     activation tile (native dtype, e.g. bf16)
    # w_ref:    (1, H, 1)         probe weight (acts dtype)
    # b_ref:    (1, 1, 1) f32     probe bias
    # plen_ref: (B, 1) int32      prompt lengths (constant block -> DMA'd once)
    # out_ref:  (1, 1, 1, B) f32  per-(layer, chunk) masked score sum
    # sum_sc:   (B, 1) f32 VMEM   accumulator
    c = pl.program_id(1)
    s = pl.program_id(2)
    n_sc = pl.num_programs(2)
    s_glob = c * n_sc + s

    @pl.when(s == 0)
    def _init():
        sum_sc[...] = jnp.zeros_like(sum_sc)

    _, B, TS, H = acts_ref.shape

    # Skip prompt-only tiles and padded (beyond-S) tiles entirely.
    @pl.when((s_glob >= smin_ref[0]) & (s_glob < n_seq_blocks))
    def _compute():
        w = w_ref[0]                         # (H, 1) acts dtype, no relayout
        bias = b_ref[0, 0, 0]                # f32 scalar
        plen = plen_ref[...]                 # (B, 1) int32
        base = s_glob * TS
        # Chunk the in-tile matvec so the (B*cur, 1) MXU output stays small
        # regardless of how large the DMA tile is.
        for start in range(0, TS, chunk):
            cur = min(chunk, TS - start)
            a = acts_ref[0, :, start:start + cur, :].reshape(B * cur, H)
            logits = jnp.dot(a, w, preferred_element_type=jnp.float32)
            logits = logits.reshape(B, cur) + bias
            scores = jax.nn.sigmoid(logits)                      # (B, cur) f32
            tok = base + start + lax.broadcasted_iota(jnp.int32, (B, cur), 1)
            mask = (tok >= plen) & (tok < seq_len)               # tail-pad safe
            sum_sc[...] += jnp.sum(jnp.where(mask, scores, 0.0),
                                   axis=1, keepdims=True)

    @pl.when(s == n_sc - 1)
    def _fin():
        out_ref[...] = sum_sc[...].reshape(1, 1, 1, B)


def probe_partial_sums(acts, probe_w, probe_b, prompt_lengths, *,
                       seq_tile=None, seq_chunks=None, inner_chunk=None):
    """Masked sigmoid-score sums per (layer, seq-chunk, batch) -> (L, C, B) f32."""
    L, B, S, H = acts.shape
    itemsize = jnp.dtype(acts.dtype).itemsize
    pack = max(8, 32 // itemsize)            # native sublane packing multiple

    vmem_cap = _vmem_capacity_bytes()
    buf_budget = int(0.30 * vmem_cap)        # per double-buffered acts buffer
    row_bytes = max(1, B * H * itemsize)
    ts_cap = max(pack, (buf_budget // row_bytes) // pack * pack)

    if seq_tile is None:
        TS = min(S, ts_cap)
    else:
        TS = min(int(seq_tile), S, ts_cap)   # user tile also respects the budget
    if TS < S:
        TS = max(pack, (TS // pack) * pack)
    TS = max(1, min(TS, S))
    n_s = pl.cdiv(S, TS)

    # Split S into C "parallel" chunks (v7x 2-TC utilisation when L == 1).
    C = (2 if L == 1 else 1) if seq_chunks is None else int(seq_chunks)
    C = max(1, min(C, n_s))
    n_sc = pl.cdiv(n_s, C)

    # In-tile matvec chunk (bounds the (N, 1) dot intermediate).
    CH = 512 if inner_chunk is None else int(inner_chunk)
    CH = max(1, min(CH, TS))
    if CH < TS:
        CH = max(pack, (CH // pack) * pack)

    w3 = probe_w.reshape(L, H, 1).astype(acts.dtype)   # probe math in acts dtype
    b3 = probe_b.reshape(L, 1, 1).astype(jnp.float32)
    plen2 = prompt_lengths.reshape(B, 1).astype(jnp.int32)
    # First sequence block containing any generated token (for DMA skipping).
    smin = jnp.clip(jnp.min(plen2) // TS, 0, n_s - 1).astype(jnp.int32).reshape(1)

    tile_bytes = B * TS * H * itemsize
    vmem_limit = min(max(2 * tile_bytes + (8 << 20), 16 << 20),
                     int(0.75 * vmem_cap))

    kernel = functools.partial(_probe_sum_kernel, seq_len=S,
                               n_seq_blocks=n_s, chunk=CH)

    def acts_map(l, c, s, smin_ref):
        blk = jnp.maximum(c * n_sc + s, smin_ref[0])   # skip prompt-only tiles
        return (l, 0, jnp.minimum(blk, n_s - 1), 0)    # clamp padded chunk tail

    out = pl.pallas_call(
        kernel,
        out_shape=jax.ShapeDtypeStruct((L, C, 1, B), jnp.float32),
        grid_spec=pltpu.PrefetchScalarGridSpec(
            num_scalar_prefetch=1,
            grid=(L, C, n_sc),
            in_specs=[
                pl.BlockSpec((1, B, TS, H), acts_map),
                pl.BlockSpec((1, H, 1), lambda l, c, s, smin_ref: (l, 0, 0)),
                pl.BlockSpec((1, 1, 1), lambda l, c, s, smin_ref: (l, 0, 0)),
                pl.BlockSpec((B, 1), lambda l, c, s, smin_ref: (0, 0)),
            ],
            out_specs=pl.BlockSpec((1, 1, 1, B),
                                   lambda l, c, s, smin_ref: (l, c, 0, 0)),
            scratch_shapes=[pltpu.VMEM((B, 1), jnp.float32)],
        ),
        compiler_params=pltpu.CompilerParams(
            dimension_semantics=("parallel", "parallel", "arbitrary"),
            vmem_limit_bytes=vmem_limit,
        ),
    )(smin, acts, w3, b3, plen2)

    return out[:, :, 0, :]                    # (L, C, B)


def probe_scores(acts, probe_w, probe_b, prompt_lengths, *,
                 seq_tile=None, seq_chunks=None, inner_chunk=None):
    """Aggregated (nanmean over generated tokens) probe scores -> (L, B) f32."""
    L, B, S, H = acts.shape
    part = probe_partial_sums(acts, probe_w, probe_b, prompt_lengths,
                              seq_tile=seq_tile, seq_chunks=seq_chunks,
                              inner_chunk=inner_chunk)          # (L, C, B)
    sums = jnp.sum(part, axis=1)                                # (L, B)
    cnt = jnp.clip(S - prompt_lengths.astype(jnp.int32), 0, None)
    cnt = cnt.astype(jnp.float32)[None, :]                      # (1, B)
    return jnp.where(cnt > 0, sums / jnp.maximum(cnt, 1.0), jnp.nan)


def _reward_epilogue(agg, labels, is_backdoored):
    """Threshold + trigger reward on the tiny (L, B) aggregate (plain JAX)."""
    pred_pos = agg > PROBE_THRESHOLD
    if NEGATIVE_IS_1:
        pred_label = jnp.where(pred_pos, 0.0, 1.0)
    else:
        pred_label = jnp.where(pred_pos, 1.0, 0.0)
    labels_f = labels.astype(jnp.float32)[None, :]
    trig = (is_backdoored.astype(jnp.float32) > 0.5)[None, :]
    correct = (pred_label > 0.5) == (labels_f > 0.5)
    base = jnp.where(correct, 1.0, -1.0)
    reward = jnp.where(trig, -base, base)
    reward = jnp.where(jnp.isnan(agg), jnp.nan, reward)  # propagate all-prompt NaN
    avg = jnp.mean(reward, axis=0)                       # mean over probe layers
    return jnp.nan_to_num(avg, nan=0.0)                  # (B,)


def reward_model_forward(acts, probe_w, probe_b, prompt_lengths, labels,
                         is_backdoored, *, seq_tile=None, seq_chunks=None,
                         inner_chunk=None):
    agg = probe_scores(acts, probe_w, probe_b, prompt_lengths,
                       seq_tile=seq_tile, seq_chunks=seq_chunks,
                       inner_chunk=inner_chunk)
    return _reward_epilogue(agg, labels, is_backdoored)


def _reference_agg(acts, probe_w, probe_b, plen):
    L, B, S, H = acts.shape
    acts32 = acts.astype(jnp.float32)
    w32 = probe_w.astype(acts.dtype).astype(jnp.float32)   # same rounding as kernel
    logits = jnp.einsum('lbsh,lh->lbs', acts32, w32) + probe_b[:, None, None]
    scores = jax.nn.sigmoid(logits)
    mask = jnp.arange(S)[None, :] >= plen[:, None]
    cnt = jnp.sum(mask, axis=1).astype(jnp.float32)
    agg = jnp.sum(jnp.where(mask[None], scores, 0.0), axis=2) / jnp.maximum(cnt, 1.0)
    return jnp.where(cnt[None] > 0, agg, jnp.nan)


if __name__ == "__main__":
    L, B, S, H = 2, 3, 64, 128

    key = jax.random.PRNGKey(0)
    k_a, k_w = jax.random.split(key, 2)

    acts = jax.random.normal(k_a, (L, B, S, H), dtype=jnp.bfloat16)   # native bf16 stream
    probe_w = jax.random.normal(k_w, (L, H), dtype=jnp.float32) * 0.05
    # Biases keep aggregated scores well away from the 0.5 threshold so tiny
    # precision differences cannot flip the reward.
    probe_b = jnp.array([2.0, -1.5], dtype=jnp.float32)

    prompt_lengths = jnp.array([19, 37, S], dtype=jnp.int32)  # last row: all prompt -> NaN -> 0
    labels = jnp.array([1.0, 0.0, 1.0], dtype=jnp.float32)
    is_backdoored = jnp.array([0.0, 1.0, 0.0], dtype=jnp.float32)

    # ---- Case 1: L=2, TS=16 -> 4 S-tiles; min(plen)=19 -> tile 0 is skipped. ----
    out = reward_model_forward(acts, probe_w, probe_b, prompt_lengths, labels,
                               is_backdoored, seq_tile=16)
    out = jax.block_until_ready(out)

    agg_kernel = probe_scores(acts, probe_w, probe_b, prompt_lengths, seq_tile=16)
    agg_ref = _reference_agg(acts, probe_w, probe_b, prompt_lengths)
    ref_out = _reward_epilogue(agg_ref, labels, is_backdoored)

    assert out.shape == (B,)
    assert jnp.allclose(agg_kernel, agg_ref, atol=2e-3, equal_nan=True), (agg_kernel, agg_ref)
    assert jnp.allclose(out, ref_out, atol=1e-6), (out, ref_out)

    # ---- Case 2: L=1 -> two "parallel" S-chunks (v7x 2-TC path); TS=48 gives a
    #      partial final tile, inner_chunk=32 exercises the 32+16 tail chunks. ----
    agg1_kernel = probe_scores(acts[:1], probe_w[:1], probe_b[:1], prompt_lengths,
                               seq_tile=48, inner_chunk=32)
    agg1_kernel = jax.block_until_ready(agg1_kernel)
    agg1_ref = _reference_agg(acts[:1], probe_w[:1], probe_b[:1], prompt_lengths)
    assert jnp.allclose(agg1_kernel, agg1_ref, atol=2e-3, equal_nan=True), (agg1_kernel, agg1_ref)

    print("KERNEL_OK")
</pallas_src>

<mosaic_0001>
module attributes {stable_mosaic.version = 11 : i64} {
  func.func @_probe_sum_kernel(%arg0: i32, %arg1: i32, %arg2: i32, %arg3: memref<1xi32, #tpu.memory_space<smem>>, %arg4: memref<1x3x16x128xbf16, #tpu.memory_space<vmem>>, %arg5: memref<1x128x1xbf16, #tpu.memory_space<vmem>>, %arg6: memref<1x1x1xf32, #tpu.memory_space<vmem>>, %arg7: memref<3x1xi32, #tpu.memory_space<vmem>>, %arg8: memref<1x1x1x3xf32, #tpu.memory_space<vmem>>, %arg9: memref<3x1xf32, #tpu.memory_space<vmem>>) attributes {dimension_semantics = [#tpu.dimension_semantics<parallel>, #tpu.dimension_semantics<parallel>, #tpu.dimension_semantics<arbitrary>], iteration_bounds = array<i64: 2, 1, 4>, scalar_prefetch = 1 : i64, scratch_operands = 1 : i64, tpu.core_type = #tpu.core_type<tc>, window_params = [{transform_indices = @transform_0, window_bounds = array<i64: 1, 3, 16, 128>}, {transform_indices = @transform_1, window_bounds = array<i64: 1, 128, 1>}, {transform_indices = @transform_2, window_bounds = array<i64: 1, 1, 1>}, {pipeline_mode = #tpu.pipeline_mode<synchronous>, transform_indices = @transform_3, window_bounds = array<i64: 3, 1>}, {transform_indices = @transform_4, window_bounds = array<i64: 1, 1, 1, 3>}]} {
    %c4_i32 = arith.constant 4 : i32
    %0 = arith.muli %arg1, %c4_i32 : i32
    %1 = arith.addi %0, %arg2 : i32
    %c0_i32 = arith.constant 0 : i32
    %2 = arith.cmpi eq, %arg2, %c0_i32 : i32
    %3 = arith.extui %2 : i1 to i32
    %c0_i32_0 = arith.constant 0 : i32
    %4 = arith.cmpi ne, %3, %c0_i32_0 : i32
    scf.if %4 {
      %cst = arith.constant 0.000000e+00 : f32
      %14 = vector.broadcast %cst : f32 to vector<3x1xf32>
      %c0_4 = arith.constant 0 : index
      %c0_5 = arith.constant 0 : index
      %15 = vector.load %arg9[%c0_4, %c0_5] : memref<3x1xf32, #tpu.memory_space<vmem>>, vector<3x1xf32>
      tpu.vector_store %arg9[%c0_4, %c0_5], %14 {strides = array<i32>} : memref<3x1xf32, #tpu.memory_space<vmem>>, vector<3x1xf32>,
    } else {
    }
    %c0 = arith.constant 0 : index
    %5 = memref.load %arg3[%c0] : memref<1xi32, #tpu.memory_space<smem>>
    %6 = arith.cmpi sge, %1, %5 : i32
    %c4_i32_1 = arith.constant 4 : i32
    %7 = arith.cmpi slt, %1, %c4_i32_1 : i32
    %8 = arith.andi %6, %7 : i1
    %9 = arith.extui %8 : i1 to i32
    %c0_i32_2 = arith.constant 0 : i32
    %10 = arith.cmpi ne, %9, %c0_i32_2 : i32
    scf.if %10 {
      %c0_4 = arith.constant 0 : index
      %c0_5 = arith.constant 0 : index
      %c0_6 = arith.constant 0 : index
      %14 = vector.load %arg5[%c0_4, %c0_5, %c0_6] : memref<1x128x1xbf16, #tpu.memory_space<vmem>>, vector<1x128x1xbf16>
      %15 = vector.shape_cast %14 : vector<1x128x1xbf16> to vector<128x1xbf16>
      %c0_7 = arith.constant 0 : index
      %c0_8 = arith.constant 0 : index
      %c0_9 = arith.constant 0 : index
      %16 = vector.load %arg6[%c0_7, %c0_8, %c0_9] : memref<1x1x1xf32, #tpu.memory_space<vmem>>, vector<1x1x1xf32>
      %17 = vector.extract %16[0, 0, 0] : f32 from vector<1x1x1xf32>
      %c0_10 = arith.constant 0 : index
      %c0_11 = arith.constant 0 : index
      %18 = vector.load %arg7[%c0_10, %c0_11] : memref<3x1xi32, #tpu.memory_space<vmem>>, vector<3x1xi32>
      %c16_i32 = arith.constant 16 : i32
      %19 = arith.muli %1, %c16_i32 : i32
      %c0_12 = arith.constant 0 : index
      %c0_13 = arith.constant 0 : index
      %c0_14 = arith.constant 0 : index
      %c0_15 = arith.constant 0 : index
      %20 = vector.load %arg4[%c0_12, %c0_13, %c0_14, %c0_15] : memref<1x3x16x128xbf16, #tpu.memory_space<vmem>>, vector<1x3x16x128xbf16>
      %21 = vector.shape_cast %20 : vector<1x3x16x128xbf16> to vector<3x16x128xbf16>
      %22 = vector.shape_cast %21 : vector<3x16x128xbf16> to vector<48x128xbf16>
      %cst = arith.constant dense<0.000000e+00> : vector<48x1xf32>
      %23 = tpu.matmul %22, %15, %cst {dimension_numbers = #tpu.dot_dimension_numbers<[1], [0], [0], [1], [0, 0, 1, 1], [], []>} : vector<48x128xbf16>, vector<128x1xbf16>, vector<48x1xf32> -> vector<48x1xf32>
      %24 = vector.shape_cast %23 : vector<48x1xf32> to vector<3x16xf32>
      %25 = vector.broadcast %17 : f32 to vector<3x16xf32>
      %26 = arith.addf %24, %25 : vector<3x16xf32>
      %27 = arith.negf %26 : vector<3x16xf32>
      %28 = math.exp %27 : vector<3x16xf32>
      %cst_16 = arith.constant 1.000000e+00 : f32
      %29 = vector.broadcast %cst_16 : f32 to vector<3x16xf32>
      %30 = arith.addf %29, %28 : vector<3x16xf32>
      %31 = arith.divf %29, %30 : vector<3x16xf32>
      %c0_i32_17 = arith.constant 0 : i32
      %32 = arith.addi %19, %c0_i32_17 : i32
      %33 = tpu.iota {dimensions = array<i32: 1>} : vector<3x16xi32>
      %34 = vector.broadcast %32 : i32 to vector<3x16xi32>
      %35 = arith.addi %34, %33 : vector<3x16xi32>
      %36 = vector.broadcast %18 : vector<3x1xi32> to vector<3x16xi32>
      %37 = arith.cmpi sge, %35, %36 : vector<3x16xi32>
      %c64_i32 = arith.constant 64 : i32
      %38 = vector.broadcast %c64_i32 : i32 to vector<3x16xi32>
      %39 = arith.cmpi slt, %35, %38 : vector<3x16xi32>
      %40 = arith.andi %37, %39 : vector<3x16xi1>
      %c0_18 = arith.constant 0 : index
      %c0_19 = arith.constant 0 : index
      %41 = vector.load %arg9[%c0_18, %c0_19] : memref<3x1xf32, #tpu.memory_space<vmem>>, vector<3x1xf32>
      %cst_20 = arith.constant 0.000000e+00 : f32
      %42 = vector.broadcast %cst_20 : f32 to vector<3x16xf32>
      %43 = arith.select %40, %31, %42 : vector<3x16xi1>, vector<3x16xf32>
      %cst_21 = arith.constant dense<0.000000e+00> : vector<3xf32>
      %44 = vector.multi_reduction <add>, %43, %cst_21 [1] : vector<3x16xf32> to vector<3xf32>
      %45 = vector.shape_cast %44 : vector<3xf32> to vector<3x1xf32>
      %46 = arith.addf %41, %45 : vector<3x1xf32>
      %c0_22 = arith.constant 0 : index
      %c0_23 = arith.constant 0 : index
      %47 = vector.load %arg9[%c0_22, %c0_23] : memref<3x1xf32, #tpu.memory_space<vmem>>, vector<3x1xf32>
      tpu.vector_store %arg9[%c0_22, %c0_23], %46 {strides = array<i32>} : memref<3x1xf32, #tpu.memory_space<vmem>>, vector<3x1xf32>,
    } else {
    }
    %c3_i32 = arith.constant 3 : i32
    %11 = arith.cmpi eq, %arg2, %c3_i32 : i32
    %12 = arith.extui %11 : i1 to i32
    %c0_i32_3 = arith.constant 0 : i32
    %13 = arith.cmpi ne, %12, %c0_i32_3 : i32
    scf.if %13 {
      %c0_4 = arith.constant 0 : index
      %c0_5 = arith.constant 0 : index
      %14 = vector.load %arg9[%c0_4, %c0_5] : memref<3x1xf32, #tpu.memory_space<vmem>>, vector<3x1xf32>
      %15 = vector.shape_cast %14 : vector<3x1xf32> to vector<1x1x1x3xf32>
      %c0_6 = arith.constant 0 : index
      %c0_7 = arith.constant 0 : index
      %c0_8 = arith.constant 0 : index
      %c0_9 = arith.constant 0 : index
      %16 = vector.load %arg8[%c0_6, %c0_7, %c0_8, %c0_9] : memref<1x1x1x3xf32, #tpu.memory_space<vmem>>, vector<1x1x1x3xf32>
      tpu.vector_store %arg8[%c0_6, %c0_7, %c0_8, %c0_9], %15 {strides = array<i32>} : memref<1x1x1x3xf32, #tpu.memory_space<vmem>>, vector<1x1x1x3xf32>,
    } else {
    }
    return
  }
  func.func @transform_0(%arg0: i32, %arg1: i32, %arg2: i32, %arg3: memref<1xi32, #tpu.memory_space<smem>>) -> (i32, i32, i32, i32) {
    %c4_i32 = arith.constant 4 : i32
    %0 = arith.muli %arg1, %c4_i32 : i32
    %1 = arith.addi %0, %arg2 : i32
    %c0 = arith.constant 0 : index
    %2 = memref.load %arg3[%c0] : memref<1xi32, #tpu.memory_space<smem>>
    %3 = arith.maxsi %1, %2 : i32
    %c3_i32 = arith.constant 3 : i32
    %4 = arith.minsi %3, %c3_i32 : i32
    %c0_i32 = arith.constant 0 : i32
    %c0_i32_0 = arith.constant 0 : i32
    %c0_i32_1 = arith.constant 0 : i32
    return %arg0, %c0_i32, %4, %c0_i32_0 : i32, i32, i32, i32
  }
  func.func @transform_1(%arg0: i32, %arg1: i32, %arg2: i32, %arg3: memref<1xi32, #tpu.memory_space<smem>>) -> (i32, i32, i32) {
    %c0_i32 = arith.constant 0 : i32
    %c0_i32_0 = arith.constant 0 : i32
    %c0_i32_1 = arith.constant 0 : i32
    return %arg0, %c0_i32, %c0_i32_0 : i32, i32, i32
  }
  func.func @transform_2(%arg0: i32, %arg1: i32, %arg2: i32, %arg3: memref<1xi32, #tpu.memory_space<smem>>) -> (i32, i32, i32) {
    %c0_i32 = arith.constant 0 : i32
    %c0_i32_0 = arith.constant 0 : i32
    %c0_i32_1 = arith.constant 0 : i32
    return %arg0, %c0_i32, %c0_i32_0 : i32, i32, i32
  }
  func.func @transform_3(%arg0: i32, %arg1: i32, %arg2: i32, %arg3: memref<1xi32, #tpu.memory_space<smem>>) -> (i32, i32) {
    %c0_i32 = arith.constant 0 : i32
    %c0_i32_0 = arith.constant 0 : i32
    %c0_i32_1 = arith.constant 0 : i32
    return %c0_i32, %c0_i32_0 : i32, i32
  }
  func.func @transform_4(%arg0: i32, %arg1: i32, %arg2: i32, %arg3: memref<1xi32, #tpu.memory_space<smem>>) -> (i32, i32, i32, i32) {
    %c0_i32 = arith.constant 0 : i32
    %c0_i32_0 = arith.constant 0 : i32
    %c0_i32_1 = arith.constant 0 : i32
    return %arg0, %arg1, %c0_i32, %c0_i32_0 : i32, i32, i32, i32
  }
}

</mosaic_0001>

<bundles_post_ra>
// kernel: tpu_custom_call.1
= control target key start
LH: loop header
LB: loop body
LE: loop exit
PB: predicated region body
PF: predicated region fallthrough
CT: control target
= control target key end

     0   :  { %s1431_s0 = inlined_call_operand.<no memory space> [shape: s32[1], index: 0, kind: input, shape index: {}]   ;;  %s1432_s1 = inlined_call_operand.hbm [shape: bf16[2,3,64,128], index: 1, kind: input, shape index: {}]   ;;  %s1433_s2 = inlined_call_operand.vmem [shape: bf16[2,128,1], index: 2, kind: input, shape index: {}]   ;;  %s1434_s3 = inlined_call_operand.vmem [shape: f32[2,1,1], index: 3, kind: input, shape index: {}]   ;;  %s1435_s4 = inlined_call_operand.vmem [shape: s32[3,1], index: 4, kind: input, shape index: {}]   ;;  %s1436_s5 = inlined_call_operand.hbm [shape: f32[2,1,1,3], index: 5, kind: output, shape index: {}]  }
   0x1   :  { %10 = sst [smem:[#allocation4]] %s1431_s0 }
   0x2   :  { %11 = vsyncpa [#allocation6], 0 }
   0x3   :  { %13 = vsyncpa [#allocation6 + $0x1], 0 }
   0x4   :  { %14 = vsyncpa [#allocation7], 0 }
   0x5   :  { %16 = vsyncpa [#allocation7 + $0x1], 0  ;;  %s1169_s20 = smov 0   ;;  %s1171_s21 = smov 0  }
   0x6   :  { %s1173_s22 = smov 0   ;;  %s1175_s23 = smov 0  }
   0x7   :  { %s1177_s24 = smov 0   ;;  %s1179_s25 = smov 0  }
   0x8   :  { %s1181_s26 = smov 0   ;;  %s1183_s27 = smov 0  }
   0x9   :  { %s1185_s0 = smov 0   ;;  %s1187_s28 = smov 0  }
   0xa   :  { %s1189_s29 = smov 0  }
   0xb LB: > { %1445 = sst [smem:[#allocation14_spill]] %s1082_s20  ;;  %s752_s30 = sadd.s32 4294967295, %s1122_s29   ;;  %s1122_s29 = sphi %s1189_s29, %s22_s29   ;;  %s1118_s28 = sphi %s1187_s28, %s1474_s28   ;;  %s1114_s0 = sphi %s1185_s0, %s1467_s0   ;;  %s1110_s27 = sphi %s1183_s27, %s1466_s27   ;;  %s1106_s26 = sphi %s1181_s26, %s1465_s26   ;;  %s1102_s25 = sphi %s1179_s25, %s1473_s25   ;;  %s1098_s24 = sphi %s1177_s24, %s1472_s24   ;;  %s1094_s23 = sphi %s1175_s23, %s1471_s23   ;;  %s1090_s22 = sphi %s1173_s22, %s1463_s22   ;;  %s1086_s21 = sphi %s1171_s21, %s1470_s21   ;;  %s1082_s20 = sphi %s1169_s20, %s1469_s20  }
   0xc   : > { %1446 = sst [smem:[#allocation15_spill]] %s1090_s22  ;;  %s34_s7 = sadd.s32 1, %s1114_s0 }
   0xd   : > { %1447 = sst [smem:[#allocation16_spill]] %s1114_s0  ;;  %s41_s8 = sadd.s32 1, %s1118_s28 }
   0xe   : > { %1448 = sst [smem:[#allocation17_spill]] %s1118_s28  ;;  %p35_p0 = scmp.ge.s32.totalorder %s34_s7, 4 }
   0xf   : > { %s47_s9 = sld [smem:[#allocation4]]  ;;  %s64_s10 = sadd.s32 1, %s1102_s25 }
  0x10   : > { %p71_p1 = scmp.ne.s32.totalorder %s1102_s25, %s1098_s24  ;;  %s1476_s7 = smov (%p35_p0, %s34_s7), 0 }
  0x11   : > { %1449 = sst [smem:[#allocation18_spill]] %s1476_s7  ;;  %s1478_s8 = smov (!%p35_p0, %s41_s8), %s1118_s28 }
  0x12   : > { %p72_p2 = scmp.eq.s32.totalorder %s1122_s29, 0  ;;  %p77_p3 = scmp.ne.s32.totalorder %s1098_s24, %s1094_s23 }
  0x13   : > { %p43_p4 = scmp.ge.s32.totalorder %s1478_s8, 2  ;;  %p78_p5 = scmp.eq.s32.totalorder %s752_s30, 0 }
  0x14   : > { %p1250_p10 = por %p72_p2, %p71_p1  ;;  %s165_s17 = sadd.s32 1, %s1090_s22 }
  0x15   : > { %p48_p6 = scmp.gt.s32.totalorder %s1114_s0, %s47_s9  ;;  %p55_p7 = scmp.gt.s32.totalorder %s1476_s7, %s47_s9 }
  0x16   : > { %s1480_s8 = smov (%p43_p4, %s1478_s8), 0  ;;  %p1257_p11 = por %p78_p5, %p77_p3 }
  0x17   : > { %1450 = sst [smem:[#allocation19_spill]] %s1480_s8  ;;  %s59_s13 = ssub.s32 %s1118_s28, %s1480_s8 }
  0x18   : > { %s49_s11 = scalar_select %p48_p6, %s1114_s0, %s47_s9 }
  0x19   : > { %s56_s12 = scalar_select %p55_p7, %s1476_s7, %s47_s9 }
  0x1a   : > { %p50_p8 = scmp.lt.s32.totalorder %s49_s11, 3  ;;  %p163_p12 = scmp.eq.s32.totalorder %s59_s13, 0 }
  0x1b   : > { %p57_p9 = scmp.lt.s32.totalorder %s56_s12, 3  ;;  %p175_p13 = scmp.ne.s32.totalorder %s1090_s22, %s1086_s21 }
  0x1c   : > { %s1482_s11 = smov (!%p50_p8, %s49_s11), 3  ;;  %p176_p4 = scmp.eq.s32.totalorder %s752_s30, 7 }
  0x1d   : > { %s1484_s12 = smov (!%p57_p9, %s56_s12), 3  ;;  %p181_p2 = scmp.ne.s32.totalorder %s1086_s21, %s1082_s20 }
  0x1e   : > { %s60_s16 = ssub.s32 %s1482_s11, %s1484_s12  ;;  %p1272_p1 = por %p176_p4, %p175_p13 }
  0x1f   : > { %s61_s18 = sor.u32 %s60_s16, %s59_s13  ;;  %s1456_s23 = sadd.s32 4294967294, %s1122_s29  }
  0x20   : > { %p62_p0 = scmp.eq.s32.totalorder %s61_s18, 0  ;;  %p182_p3 = scmp.eq.s32.totalorder %s1456_s23, 7 }
  0x21   : > { %s1267_s19 = scalar_select %p163_p12, %s1090_s22, %s165_s17  }
  0x22   : > { %s1270_s9 = scalar_select %p62_p0, %s1102_s25, %s64_s10  }
  0x23   : > { %1453 = sst [smem:[#allocation20_spill]] %s1267_s19  ;;  %p1280_p5 = por %p182_p3, %p181_p2 }
  0x24   : > { %1454 = sst [smem:[#allocation21_spill]] %s1270_s9  ;;  %p755_p6 = scmp.ge.s32.totalorder %s1122_s29, 8 }
  0x25   : > { %s1457_s8 = scalar_select %p1280_p5, 1, 0 }
  0x26   : > { %201 = sbr.rel (%p755_p6) target bundleno = 63 (0x3f), region = 20 }
  0x27   : > { %1458 = sst [smem:[#allocation22_spill]] %s1457_s8 }
  0x2d   : > { %s1439_s30 = sand.u32 1, %s1102_s25   ;;  %s212_s10 = sld [smem:[#allocation4]] }
  0x2e   : > { %s842_s11 = smul.u32 24, %s1439_s30  ;;  %s1124_s13 = smov 512  }
  0x2f   : > { %s843_s12 = smul.u32 24, %s1118_s28  ;;  %848 = sst [smem:[#allocation10]] (%p1250_p10), %s1124_s13 }
  0x30   : > { %s847_s16 = scalar_select %p1250_p10, [#allocation0], [#allocation11] }
  0x31   : > { %s209_s17 = scalar_lea.vmem [#allocation5], %s842_s11  ;;  %s1125_s7 = smov 128  }
  0x32   : > { %s237_s18 = sshll.u32 %s209_s17, 4  ;;  %s229_s23 = sld [smem:[%s847_s16]]   ;;  %s238_s18 = int_to_ptr.vmem [resolvable:$true] %s237_s18 }
  0x33   : > { %p213_p7 = scmp.gt.s32.totalorder %s1114_s0, %s212_s10  ;;  %849 = sst [smem:[#allocation10 + $0x1]] (%p1250_p10), %s1125_s7 }
  0x34   : > { %s1126_s30 = smov 2   ;;  %s1127_s13 = smov 64  }
  0x35   : > { %s214_s9 = scalar_select %p213_p7, %s1114_s0, %s212_s10 }
  0x36   : > { %850 = sst [smem:[#allocation10 + $0x2]] (%p1250_p10), %s1126_s30  ;;  %s1128_s19 = smov 4  }
  0x37   : > { %p215_p8 = scmp.lt.s32.totalorder %s214_s9, 3  ;;  %851 = sst [smem:[#allocation10 + $0x3]] (%p1250_p10), %s1127_s13 }
  0x38   : > { %s758_s11 = sshll.u32 %s229_s23, 26  ;;  %852 = sst [smem:[#allocation10 + $0x4]] (%p1250_p10), %s1127_s13 }
  0x39   : > { %s1486_s9 = smov (!%p215_p8, %s214_s9), 3  ;;  %s759_s17 = sadd.s32 134217728, %s758_s11 }
  0x3a   : > { %s756_s16 = sshll.u32 %s1486_s9, 1  ;;  %853 = sst [smem:[#allocation10 + $0x5]] (%p1250_p10), %s1128_s19 }
  0x3b   : > { %s222_s28 = sadd.s32 %s843_s12, %s756_s16  ;;  %s1459_s8 = sand.u32 1, %s1102_s25  }
  0x3c   : > { %s757_s7 = sshll.u32 %s222_s28, 6  ;;  %s206_s30 = scalar_lea.sflag [#allocation6], %s1459_s8 }
  0x3d   : > { %s224_s22 = scalar_lea.hbm %s1432_s1, %s757_s7  ;;  %s1129_s20 = smov [#allocation9]  }
  0x3e   : > { %854 = dma.general (%p1250_p10), %s224_s22, 384, %s238_s18, %s206_s30, %s1129_s20, [#allocation10], %s759_s17, 0  }
  0x3f PF: > { %p760_p9 = scmp.ge.s32.totalorder %s1122_s29, 1  ;;  %p272_p12 = scmp.lt.s32.totalorder %s1122_s29, 9 }
  0x41   : > { %p273_p13 = pnand %p760_p9, %p272_p12 }
  0x42   : > { %s278_s19 = sand.u32 (!%p273_p13), 1, %s1098_s24  }
  0x43   : > { %276 = sbr.rel (%p273_p13) target bundleno = 818 (0x332), region = 36  ;;  %s279_s9 = scalar_lea.sflag (!%p273_p13), [#allocation6], %s278_s19 }
  0x44   : > { %s844_s28 = smul.u32 (!%p273_p13), 24, %s278_s19 }
  0x46   : > { %s1315_s12 = scalar_lea.vmem (!%p273_p13), [#allocation5], %s844_s28 }
  0x4a   : > { %1073 = dma.done.wait (%p1257_p11), %s279_s9, 384  }
  0x4b   : > { %1075 = vsyncadd (%p1257_p11), %s279_s9, 4294966912  ;;  %s312_s20 = sand.u32 1, %s1086_s21   ;;  %p322_p10 = scmp.lt.s32.totalorder %s1110_s27, 1 }
  0x4c   : > { %s1338_s11 = scalar_lea.vmem [#allocation8], %s312_s20  ;;  %p763_p11 = scmp.ne.s32.totalorder %s1106_s26, 0 }
  0x4d   : > { %s1324_s22 = scalar_select %p322_p10, %s1110_s27, 1 }
  0x4e   : > { %336 = sbr.rel (%p763_p11) target bundleno = 85 (0x55), region = 44  ;;  %vm337_vm0 = vcmask (!%p763_p11), 2048   ;;  %v1130_v0 = vmov (!%p763_p11), 0.0  }
  0x4f   : > { %s786_s0 = sshll.u32 %s1324_s22, 6  ;;  %s329_s18 = scalar_lea.vmem %s1434_s3, %s1324_s22  ;;  %338 = vst.msk [vmem:[#allocation2] sm:$0x7] (!%p763_p11), %vm337_vm0, %v1130_v0 }
  0x50   : > { %s1334_s15 = scalar_lea.vmem %s1433_s2, %s786_s0 }
  0x55 PF: > { %s339_s16 = sld [smem:[#allocation4]]  ;;  %p341_p0 = scmp.lt.s32.totalorder %s1106_s26, 4 }
  0x5b   : > { %p340_p4 = scmp.ge.s32.totalorder %s1106_s26, %s339_s16 }
  0x5d   : > { %p342_p2 = pnand %p341_p0, %p340_p4 }
  0x5e   : > { %v964_v1 = vld [vmem:[%s1334_s15] sm:$0xff] (!%p342_p2)   ;;  %v1131_v2 = vmov (!%p342_p2), 0.0   ;;  %v965_v3 = vld [vmem:[%s1334_s15 + $0x8] sm:$0xff] (!%p342_p2)   ;;  %vm1132_vm1 = vmmov (!%p342_p2), 0   ;;  %v966_v4 = vld [vmem:[%s1334_s15 + $0x10] sm:$0xff] (!%p342_p2)   ;;  %v1133_v14 = vmov (!%p342_p2), 0   ;;  %v538_v59 = vlaneseq (!%p342_p2) }
  0x5f   : > { %345 = sbr.rel (%p342_p2) target bundleno = 656 (0x290), region = 48  ;;  %798 = vmatprep.subr.bf16.mxu0 (!%p342_p2), %v1131_v2  ;;  %826 = vmatprep.subr.bf16.mxu1 (!%p342_p2), %v1131_v2  ;;  %v967_v5 = vld [vmem:[%s1334_s15 + $0x18] sm:$0xff] (!%p342_p2)   ;;  %v362_v6 = vld [vmem:[%s329_s18] sm:$0x1] (!%p342_p2)  ;;  %v969_v8 = vld [vmem:[%s1334_s15 + $0x28] sm:$0xff] (!%p342_p2)   ;;  %s764_s28 = sshll.u32 (!%p342_p2), %s1106_s26, 4 }
  0x60   : > { %799 = vmatpush3.bf16.msra.mxu0 (!%p342_p2), %v964_v1  ;;  %834 = vmatpush3.bf16.msra.mxu1 (!%p342_p2), %v964_v1  ;;  %845 = vpush (!%p342_p2), %v362_v6  ;;  %v968_v7 = vld [vmem:[%s1334_s15 + $0x20] sm:$0xff] (!%p342_p2)   ;;  %v970_v9 = vld [vmem:[%s1334_s15 + $0x30] sm:$0xff] (!%p342_p2)   ;;  %v971_v10 = vld [vmem:[%s1334_s15 + $0x38] sm:$0xff] (!%p342_p2)   ;;  %v539_v60 = vand.u32 (!%p342_p2), 127, %v538_v59  ;;  %v574_v62 = vshrl.u32 (!%p342_p2), %v538_v59, 7  ;;  %vm582_vm2 = vcmask (!%p342_p2), 130112  }
  0x61   : > { %800 = vmatprep.subr.bf16.mxu0 (!%p342_p2), %v1131_v2  ;;  %827 = vmatprep.subr.bf16.mxu1 (!%p342_p2), %v1131_v2  ;;  %v972_v11 = vld [vmem:[%s1315_s12] sm:$0xff] (!%p342_p2)   ;;  %v973_v12 = vld [vmem:[%s1315_s12 + $0x8] sm:$0xff] (!%p342_p2)   ;;  %v974_v13 = vld [vmem:[%s1315_s12 + $0x10] sm:$0xff] (!%p342_p2)   ;;  %vm602_vm3 = vcmask (!%p342_p2), 1041409   ;;  %vm604_vm5 = vcmask (!%p342_p2), 1042434   ;;  %vm608_vm7 = vcmask (!%p342_p2), 124928  }
  0x62   : > { %814 = vmatprep.mubr.msk.bf16.mxu0 (!%p342_p2), %vm1132_vm1, %v1131_v2  ;;  %818 = vmatprep.mubr.msk.bf16.mxu1 (!%p342_p2), %vm1132_vm1, %v1131_v2  ;;  %v364_v58 = vld [vmem:[%s1435_s4] sm:$0x7] (!%p342_p2)  ;;  %v577_v61 = vadd.s32 (!%p342_p2), 4294967288, %v539_v60  ;;  %vm613_vm9 = vcmask (!%p342_p2), 2048  }
  0x63   : > { %963 = vset.pattern.permute.xlu1 (!%p342_p2), %v1133_v14  ;;  %962 = vset.pattern.permute.xlu0 (!%p342_p2), %v1133_v14 }
  0x64   : > { %801 = vmatpush3.bf16.msra.mxu0 (!%p342_p2), %v965_v3  ;;  %835 = vmatpush3.bf16.msra.mxu1 (!%p342_p2), %v965_v3  ;;  %v580_v1 = vsub.s32 (!%p342_p2), %v577_v61, %v574_v62 }
  0x65   : > { %802 = vmatprep.subr.bf16.mxu0 (!%p342_p2), %v1131_v2  ;;  %828 = vmatprep.subr.bf16.mxu1 (!%p342_p2), %v1131_v2 }
  0x68   : > { %803 = vmatpush3.bf16.msra.mxu0 %v966_v4  ;;  %836 = vmatpush3.bf16.msra.mxu1 %v966_v4  ;;  %v540_v4 = vstv %s764_s28 }
  0x69   : > { %804 = vmatprep.subr.bf16.mxu0 %v1131_v2  ;;  %829 = vmatprep.subr.bf16.mxu1 %v1131_v2 }
  0x6c   : > { %805 = vmatpush3.bf16.msra.mxu0 %v967_v5  ;;  %837 = vmatpush3.bf16.msra.mxu1 %v967_v5 }
  0x6d   : > { %806 = vmatprep.subr.bf16.mxu0 %v1131_v2  ;;  %830 = vmatprep.subr.bf16.mxu1 %v1131_v2 }
  0x70   : > { %807 = vmatpush3.bf16.msra.mxu0 %v968_v7  ;;  %838 = vmatpush3.bf16.msra.mxu1 %v968_v7 }
  0x71   : > { %808 = vmatprep.subr.bf16.mxu0 %v1131_v2  ;;  %831 = vmatprep.subr.bf16.mxu1 %v1131_v2 }
  0x74   : > { %809 = vmatpush3.bf16.msra.mxu0 %v969_v8  ;;  %839 = vmatpush3.bf16.msra.mxu1 %v969_v8  ;;  %v541_v8 = vadd.s32 %v540_v4, %v539_v60 }
  0x75   : > { %810 = vmatprep.subr.bf16.mxu0 %v1131_v2  ;;  %832 = vmatprep.subr.bf16.mxu1 %v1131_v2 }
  0x76   : > { %vm546_vm4 = vcmp.lt.s32.totalorder %v541_v8, 64 }
  0x78   : > { %811 = vmatpush3.bf16.msra.mxu0 %v970_v9  ;;  %840 = vmatpush3.bf16.msra.mxu1 %v970_v9 }
  0x79   : > { %812 = vmatprep.subr.bf16.mxu0 %v1131_v2  ;;  %833 = vmatprep.subr.bf16.mxu1 %v1131_v2 }
  0x7c   : > { %813 = vmatpush3.bf16.msra.mxu0 %v971_v10  ;;  %841 = vmatpush3.bf16.msra.mxu1 %v971_v10 }
  0x7f   : > { %815 = vmatmul.mubr.bf16.vlgmr.msra.gmra.mrb[0].mxu0 %v972_v11  ;;  %819 = vmatmul.mubr.bf16.vlgmr.msra.gmra.mrb[0].mxu1 %v973_v12 }
  0x80   : > { %822 = vmatprep.mubr.msk.bf16.mxu1 %vm1132_vm1, %v1131_v2  ;;  %v575_v2 = vsub.s32 %v539_v60, %v574_v62 }
  0x87   : > { %823 = vmatmul.mubr.bf16.gmra.mrb[4].mxu1 %v974_v13 }
  0x91   : > { %s846_s10 = spop %845 }
  0x92   : > { %v495_v15 = vstv %s846_s10 }
 0x152   : > { %v472_v16 = vpop.f32.mrb[0].mxu0  ;;  %v480_v17 = vpop.f32.mrb[0].mxu1 }
 0x153   : > { %v496_v18 = vadd.f32 %v495_v15, %v472_v16  ;;  %v498_v19 = vadd.f32 %v495_v15, %v480_v17  ;;  %v816_v20 = vpop.f32.mrb[1].mxu0  ;;  %v820_v21 = vpop.f32.mrb[1].mxu1 }
 0x154   : > { %v475_v22 = vpop.f32.mrb[2].mxu0  ;;  %v483_v23 = vpop.f32.mrb[2].mxu1 }
 0x155   : > { %v776_v24 = vmul.f32 -1.442695, %v496_v18  ;;  %v778_v25 = vmul.f32 -1.442695, %v498_v19  ;;  %v497_v26 = vadd.f32 %v495_v15, %v475_v22  ;;  %v499_v27 = vadd.f32 %v495_v15, %v483_v23  ;;  %v817_v28 = vpop.f32.mrb[3].mxu0  ;;  %v821_v29 = vpop.f32.mrb[3].mxu1 }
 0x156   : > { %v548_v23 = vld [vmem:[#allocation2] sm:$0x7] }
 0x157   : > { %975 = vpow2.f32 %v776_v24  ;;  %v777_v30 = vmul.f32 -1.442695, %v497_v26  ;;  %v779_v31 = vmul.f32 -1.442695, %v499_v27 }
 0x158   : > { %977 = vpow2.f32 %v778_v25 }
 0x159   : > { %979 = vpow2.f32 %v777_v30 }
 0x15a   : > { %981 = vpow2.f32 %v779_v31  ;;  %v488_v32 = vpop.f32.mrb[4].mxu1 }
 0x15b   : > { %v500_v33 = vadd.f32 %v495_v15, %v488_v32  ;;  %v824_v34 = vpop.f32.mrb[5].mxu1 }
 0x15c   : > { %v491_v35 = vpop.f32.mrb[6].mxu1 }
 0x15d   : > { %v780_v36 = vmul.f32 -1.442695, %v500_v33  ;;  %v501_v37 = vadd.f32 %v495_v15, %v491_v35  ;;  %v825_v38 = vpop.f32.mrb[7].mxu1 }
 0x15f   : > { %983 = vpow2.f32 %v780_v36  ;;  %v781_v39 = vmul.f32 -1.442695, %v501_v37 }
 0x161   : > { %v976_v40 = vpop.eup %975  ;;  %985 = vpow2.f32 %v781_v39 }
 0x162   : > { %v978_v41 = vpop.eup %977  ;;  %v520_v42 = vadd.f32 1.0, %v976_v40 }
 0x163   : > { %v980_v43 = vpop.eup %979  ;;  %v522_v44 = vadd.f32 1.0, %v978_v41 }
 0x164   : > { %v982_v45 = vpop.eup %981  ;;  %987 = vrcp.f32 %v520_v42  ;;  %v521_v46 = vadd.f32 1.0, %v980_v43 }
 0x165   : > { %989 = vrcp.f32 %v522_v44  ;;  %v523_v47 = vadd.f32 1.0, %v982_v45 }
 0x166   : > { %991 = vrcp.f32 %v521_v46 }
 0x167   : > { %993 = vrcp.f32 %v523_v47 }
 0x169   : > { %v984_v48 = vpop.eup %983 }
 0x16a   : > { %v524_v49 = vadd.f32 1.0, %v984_v48 }
 0x16b   : > { %v986_v50 = vpop.eup %985 }
 0x16c   : > { %995 = vrcp.f32 %v524_v49  ;;  %v525_v51 = vadd.f32 1.0, %v986_v50 }
 0x16e   : > { %v988_v52 = vpop.eup %987  ;;  %997 = vrcp.f32 %v525_v51 }
 0x16f   : > { %v990_v53 = vpop.eup %989  ;;  %556 = vperm.xlu0 %962, %v988_v52  }
 0x170   : > { %562 = vperm.xlu1 %963, %v990_v53   ;;  %v992_v54 = vpop.eup %991 }
 0x171   : > { %v994_v55 = vpop.eup %993 }
 0x173   : > { %559 = vperm.xlu0 %962, %v992_v54  }
 0x174   : > { %565 = vperm.xlu1 %963, %v994_v55  }
 0x176   : > { %v996_v56 = vpop.eup %995 }
 0x177   : > { %568 = vperm.xlu0 %962, %v996_v56  }
 0x178   : > { %v998_v57 = vpop.eup %997 }
 0x179   : > { %571 = vperm.xlu1 %963, %v998_v57  }
 0x17b   : > { %543 = vperm.xlu0 %962, %v364_v58  }
 0x1ee   : > { %v557_v63 = vpop.permute.xlu0 %556 }
 0x1ef   : > { %v563_v0 = vpop.permute.xlu1 %562  ;;  %v576_v10 = vrot.slane %v557_v63, %v575_v2 }
 0x1f0   : > { %v587_v9 = vrot.slane %v563_v0, %v575_v2 }
 0x1f2   : > { %v560_v3 = vpop.permute.xlu0 %559 }
 0x1f3   : > { %v566_v5 = vpop.permute.xlu1 %565  ;;  %v581_v7 = vrot.slane %v560_v3, %v580_v1 }
 0x1f4   : > { %v591_v6 = vrot.slane %v566_v5, %v580_v1 }
 0x1f5   : > { %v583_v13 = vsel %vm582_vm2, %v581_v7, %v576_v10 }
 0x1f6   : > { %v569_v11 = vpop.permute.xlu0 %568  ;;  %v592_v12 = vsel %vm582_vm2, %v591_v6, %v587_v9 }
 0x1f7   : > { %v596_v15 = vrot.slane %v569_v11, %v575_v2  ;;  %v603_v19 = vsel %vm602_vm3, %v592_v12, %v583_v13 }
 0x1f8   : > { %v572_v14 = vpop.permute.xlu1 %571 }
 0x1f9   : > { %v600_v16 = vrot.slane %v572_v14, %v580_v1 }
 0x1fa   : > { %v544_v17 = vpop.permute.xlu0 %543 }
 0x1fb   : > { %vm545_vm6 = vcmp.ge.s32.totalorder %v541_v8, %v544_v17  ;;  %v601_v18 = vsel %vm582_vm2, %v600_v16, %v596_v15 }
 0x1fc   : > { %vm547_vm8 = vmand %vm545_vm6, %vm546_vm4  ;;  %v605_v20 = vsel %vm604_vm5, %v601_v18, %v603_v19 }
 0x1fd   : > { %v607_v21 = vsel %vm547_vm8, %v605_v20, 0.0 }
 0x1fe   : > { %v609_v22 = vsel %vm608_vm7, %v607_v21, 0.0 }
 0x1ff   : > { %610 = vadd.xlane.f32.xlu1 %v609_v22 }
 0x28c   : > { %v611_v24 = vpop.xlane.xlu1 %610 }
 0x28d   : > { %v612_v25 = vadd.f32 %v611_v24, %v548_v23 }
 0x28f   : > { %614 = vst.msk [vmem:[#allocation2] sm:$0x7] %vm613_vm9, %v612_v25 }
 0x290 PF: > { %p782_p3 = scmp.ne.s32.totalorder %s1106_s26, 3 }
 0x291   : > { %v1134_v27 = vmov (!%p782_p3), 0   ;;  %v624_v28 = vlaneseq (!%p782_p3)  ;;  %vm631_vm10 = vcmask (!%p782_p3), 16384  }
 0x292   : > { %618 = sbr.rel (%p782_p3) target bundleno = 794 (0x31a), region = 52  ;;  %999 = vset.pattern.permute.xlu0 (!%p782_p3), %v1134_v27 }
 0x293   : > { %v625_v29 = vand.u32 (!%p782_p3), 127, %v624_v28  ;;  %v627_v30 = vshrl.u32 (!%p782_p3), %v624_v28, 7 }
 0x295   : > { %v628_v31 = vsub.s32 (!%p782_p3), %v625_v29, %v627_v30 }
 0x296   : > { %v619_v26 = vld [vmem:[#allocation2] sm:$0x7] (!%p782_p3) }
 0x297   : > { %622 = vperm.xlu0 (!%p782_p3), %999, %v619_v26  }
 0x316   : > { %v623_v32 = vpop.permute.xlu0 %622 }
 0x317   : > { %v629_v33 = vrot.slane %v623_v32, %v628_v31 }
 0x319   : > { %632 = vst.msk [vmem:[%s1338_s11] sm:$0x1] %vm631_vm10, %v629_v33 }
 0x31a PF: > { %s783_s26 = sshll.u32 %s1110_s27, 4  ;;  %s647_s0 = sshll.u32 %s1338_s11, 4  ;;  %s648_s0 = int_to_ptr.vmem [resolvable:$true] %s647_s0 }
 0x31b   : > { %s1372_s22 = scalar_lea.hbm %s1436_s5, %s783_s26  ;;  %s634_s8 = scalar_lea.sflag [#allocation7], %s312_s20 }
 0x31c   : > { %s1000_s14 = scalar_lea.vmem %s648_s0, 16  ;;  %s1135_s18 = smov [#allocation8]  }
 0x31d   : > { %p1001_p6 = scmp.ne.s32.totalorder %s648_s0, %s1000_s14  ;;  %s1004_s23 = sshll.u32 %s1135_s18, 4  ;;  %s1005_s23 = int_to_ptr.vmem [resolvable:$false] %s1004_s23 }
 0x31e   : > { %s1006_s13 = scalar_lea.vmem %s1005_s23, 32  ;;  %p1007_p9 = scmp.lt.s32.totalorder %s648_s0, %s1005_s23 }
 0x31f   : > { %p1002_p7 = pnand %p1001_p6, %p1272_p1  ;;  %p1008_p12 = scmp.lt.s32.totalorder %s1006_s13, %s1000_s14 }
 0x321   : > { %p1003_p8 = pneg %p1002_p7  ;;  %p1009_p13 = por %p1008_p12, %p1007_p9 }
 0x323   : > { %p1010_p10 = pnand %p1009_p13, %p1003_p8 }
 0x325   : > { %1013 = shalt.err (!%p1010_p10)
}
 0x326   : > { %s1014_s27 = scalar_lea.hbm %s1372_s22, 16  ;;  %s1018_s11 = scalar_lea.hbm %s1436_s5, 32 }
 0x327   : > { %p1015_p11 = scmp.ne.s32.totalorder %s1372_s22, %s1014_s27  ;;  %p1019_p2 = scmp.lt.u32.totalorder %s1372_s22, %s1436_s5 }
 0x328   : > { %p1020_p3 = scmp.lt.u32.totalorder %s1018_s11, %s1014_s27  ;;  %p1022_p7 = scmp.lt.u32.totalorder %s1014_s27, %s1372_s22 }
 0x329   : > { %p1016_p0 = pnand %p1015_p11, %p1272_p1 }
 0x32a   : > { %p1021_p6 = por %p1020_p3, %p1019_p2 }
 0x32b   : > { %p1017_p4 = pneg %p1016_p0 }
 0x32c   : > { %p1023_p8 = por %p1022_p7, %p1021_p6 }
 0x32e   : > { %p1024_p9 = pnand %p1023_p8, %p1017_p4 }
 0x330   : > { %1027 = shalt.err (!%p1024_p9)
}
 0x331   : > { %856 = dma.vmem_to_hbm [thread:$0]  (%p1272_p1), %s648_s0, 16, %s1372_s22, %s634_s8  }
 0x332 PF: > { %s1460_s7 = sld [smem:[#allocation14_spill]]  ;;  %p862_p12 = scmp.ge.s32.totalorder %s1122_s29, 2 }
 0x334   : > { %p859_p13 = pnand %p862_p12, %p1280_p5 }
 0x338   : > { %s659_s30 = sand.u32 1, %s1460_s7  }
 0x339   : > { %s660_s19 = scalar_lea.sflag [#allocation7], %s659_s30 }
 0x33a   : > { %1077 = dma.done.wait (!%p859_p13), %s660_s19, 16  }
 0x33b   : > { %1079 = vsyncadd (!%p859_p13), %s660_s19, 4294967280  ;;  %s22_s29 = sadd.s32 1, %s1122_s29   ;;  %s1462_s28 = sld [smem:[#allocation15_spill]] }
 0x33c   : > { %p19_p10 = scmp.ge.s32.totalorder %s22_s29, 10   ;;  %s1463_s22 = sld [smem:[#allocation20_spill]] }
 0x33d   : > { %s1464_s6 = sld [smem:[#allocation21_spill]]  ;;  %s1465_s26 = sld [smem:[#allocation16_spill]] }
 0x33e   : > { %s1466_s27 = sld [smem:[#allocation17_spill]]  ;;  %s1467_s0 = sld [smem:[#allocation18_spill]] }
 0x33f   : > { %s1468_s9 = sld [smem:[#allocation19_spill]]  ;;  %s1469_s20 = smov %s1086_s21 }
 0x340   : > { %s1471_s23 = smov %s1098_s24  ;;  %s1472_s24 = smov %s1102_s25 }
 0x341   : > { %s1470_s21 = smov %s1462_s28  ;;  %21 = sbr.rel (!%p19_p10) target bundleno = 11 (0xb), region = 104 }
 0x343   : > { %s1473_s25 = smov %s1464_s6 }
 0x345   : > { %s1474_s28 = smov %s1468_s9 }
 0x348   :  { %664 = vsyncpa [#allocation6], 1 }
 0x349   :  { %666 = vsyncpa [#allocation6 + $0x1], 1 }
 0x34a   :  { %667 = vsyncpa [#allocation7], 1 }
 0x34b   :  { %669 = vsyncpa [#allocation7 + $0x1], 1 }

</bundles_post_ra>
